<compile_context>
chip_gen: v6e
topology: v6e:2x2x1
jax: 0.10.0
libtpu: 0.0.40
codegen_flags: <defaults>
</compile_context>

<pallas_src>
import functools
import math

import jax
import jax.numpy as jnp
from jax.experimental import pallas as pl
from jax.experimental.pallas import tpu as pltpu


def _round_up(x, m):
    return (x + m - 1) // m * m


def _vmem_capacity_bytes():
    """Physical VMEM per TensorCore; conservative (v7x) fallback."""
    try:
        return int(pltpu.get_tpu_info().vmem_capacity_bytes)
    except Exception:
        return 64 * 1024 * 1024


def _mgl_kernel(x_ref, mean_ref, sstd_ref, noise_ref, o_ref, w_sc, acc_sc, *,
                num_mixtures, nk):
    """Grid = (O_tiles, K_tiles, B_tiles); B innermost.

    x_ref:     VMEM (TB, TK)                 compute dtype
    mean_ref:  VMEM (TK, TO)                 param dtype  (sum_i mw[i]*means[i])
    sstd_ref:  VMEM (num_mixtures, TK, TO)   param dtype  (mw[i]*exp(log_std[i]))
    noise_ref: VMEM (num_mixtures, TK, TO)   param dtype
    o_ref:     VMEM (TB, TO)                 output dtype
    w_sc:      VMEM (TK, TO)                 compute dtype (mixed weight tile)
    acc_sc:    VMEM (nB, TB, TO) f32         only when nk > 1 (K accumulators)
    """
    k = pl.program_id(1)
    b = pl.program_id(2)

    # Build the mixed effective-weight tile once per (O, K) tile; reuse it for
    # every batch tile (B is the innermost grid axis). Mix in f32, store in
    # compute dtype for the MXU.
    @pl.when(b == 0)
    def _build_weight():
        w = mean_ref[...].astype(jnp.float32)
        for i in range(num_mixtures):            # small static unroll
            w = w + (sstd_ref[i].astype(jnp.float32)
                     * noise_ref[i].astype(jnp.float32))
        w_sc[...] = w.astype(w_sc.dtype)

    # (TB, TK) @ (TK, TO) on the MXU, f32 accumulation, lane-dense output.
    part = jnp.dot(x_ref[...], w_sc[...], preferred_element_type=jnp.float32)

    if nk == 1:
        o_ref[...] = part.astype(o_ref.dtype)
    else:
        @pl.when(k == 0)
        def _first():
            acc_sc[b] = part

        @pl.when(jnp.logical_and(k > 0, k < nk - 1))
        def _middle():
            acc_sc[b] = acc_sc[b] + part

        # Store the output only on the last K step (no redundant acc write).
        # Intermediate HBM writebacks of this block may carry stale data but
        # are overwritten by this final, sequentially-later write. Valid only
        # because the K and B axes are "arbitrary" (sequential per core).
        @pl.when(k == nk - 1)
        def _last():
            o_ref[...] = (acc_sc[b] + part).astype(o_ref.dtype)


def prepare_params(means, log_stddevs, mixture_weights,
                   param_dtype=jnp.bfloat16):
    """One-time fold + layout of the torch-style [M, O, I] parameters.

    Returns:
      mean_eff   [I, O]    = sum_i mw[i] * means[i]
      scaled_std [M, I, O] = mw[i] * exp(log_stddevs[i])
    Re-run whenever the parameters change (free at inference; one cheap fused
    XLA pass per training step).
    """
    means = jnp.asarray(means, jnp.float32)
    log_stddevs = jnp.asarray(log_stddevs, jnp.float32)
    mw = jnp.asarray(mixture_weights, jnp.float32)
    mean_eff = jnp.einsum("m,moi->io", mw, means)
    scaled_std = jnp.transpose(mw[:, None, None] * jnp.exp(log_stddevs),
                               (0, 2, 1))
    return mean_eff.astype(param_dtype), scaled_std.astype(param_dtype)


def mixture_gaussian_linear(x, mean_eff, scaled_std, key=None, noise=None, *,
                            compute_dtype=jnp.bfloat16,
                            tb_max=256, to_max=256, tk_max=512, nb_cap=16):
    """Pallas forward of MixtureGaussianLinear.

    x: [..., in_features]; mean_eff: [I, O]; scaled_std: [M, I, O]
    (both from prepare_params). `noise`, if given, must be [M, I, O] ~ N(0,1).
    Returns [..., out_features] in x.dtype.
    """
    num_mixtures, in_features, out_features = scaled_std.shape
    assert mean_eff.shape == (in_features, out_features)
    assert x.shape[-1] == in_features
    param_dtype = mean_eff.dtype
    out_dtype = x.dtype

    lead = x.shape[:-1]
    x2d = x.reshape(-1, in_features).astype(compute_dtype)
    batch = x2d.shape[0]

    if noise is None:
        if key is None:
            raise ValueError("pass either `key` or `noise`")
        noise = jax.random.normal(key, scaled_std.shape, dtype=jnp.float32)
    noise = jnp.asarray(noise).astype(param_dtype)
    # TODO(synk): optionally draw the Gaussian noise in-kernel
    # (pltpu.prng_seed + pltpu.stateful_normal at b == 0) to drop the whole
    # [M, I, O] noise HBM stream; requires masking the padded (I, O) region.

    cap = _vmem_capacity_bytes()
    if cap <= 64 * 1024 * 1024:          # v7x-class: 64 MiB per TensorCore
        tk_max = min(tk_max, 256)

    # MXU/(8,128)-friendly tiles; unaligned shapes are zero-padded.
    tb = min(tb_max, _round_up(batch, 8))
    if out_features >= 256:              # keep >= 2 O tiles for megacore sharding
        to = min(to_max, _round_up(-(-out_features // 2), 128))
    else:
        to = min(to_max, _round_up(out_features, 128))
    tk = min(tk_max, _round_up(in_features, 128))

    o_pad = _round_up(out_features, to)
    i_pad = _round_up(in_features, tk)
    no, nk = o_pad // to, i_pad // tk

    def _pad_param(p, has_mix_axis):
        if (i_pad, o_pad) == (in_features, out_features):
            return p
        pad = ((0, i_pad - in_features), (0, o_pad - out_features))
        return jnp.pad(p, ((0, 0),) + pad if has_mix_axis else pad)

    mean_p = _pad_param(mean_eff, False)
    sstd_p = _pad_param(scaled_std, True)
    noise_p = _pad_param(noise, True)

    x_item = jnp.dtype(compute_dtype).itemsize
    p_item = jnp.dtype(param_dtype).itemsize
    o_item = jnp.dtype(out_dtype).itemsize

    def _run_chunk(x_chunk):
        rows = x_chunk.shape[0]
        b_pad = _round_up(rows, tb)
        nb = b_pad // tb
        if (b_pad, i_pad) != x_chunk.shape:
            x_chunk = jnp.pad(x_chunk, ((0, b_pad - rows),
                                        (0, i_pad - in_features)))

        kernel_body = functools.partial(_mgl_kernel,
                                        num_mixtures=num_mixtures, nk=nk)
        # TODO(synk): add pipeline_mode=pl.Buffered(3) on the param BlockSpecs
        # for the tiny-batch (nb <= 2) regime once VMEM headroom is confirmed.
        scratch = [pltpu.VMEM((tk, to), compute_dtype)]
        if nk > 1:
            scratch.append(pltpu.VMEM((nb, tb, to), jnp.float32))
            kernel = kernel_body
        else:
            kernel = lambda xr, mr, sr, nr, orf, wr: kernel_body(
                xr, mr, sr, nr, orf, wr, None)

        # VMEM budget: double-buffered tiles + scratch + compiler slack,
        # clamped to ~80% of the per-TensorCore physical capacity.
        est = (2 * tb * tk * x_item
               + 2 * (1 + 2 * num_mixtures) * tk * to * p_item
               + 2 * tb * to * o_item
               + tk * to * x_item
               + (nb * tb * to * 4 if nk > 1 else 0)
               + (4 << 20))
        vmem_limit = int(min(max(est, 32 * 1024 * 1024), 0.8 * cap))
        vmem_limit = max(vmem_limit, min(est, int(0.9 * cap)))

        cost = pl.CostEstimate(
            flops=2 * b_pad * i_pad * o_pad + 2 * num_mixtures * i_pad * o_pad,
            transcendentals=0,
            bytes_accessed=(no * b_pad * i_pad * x_item            # x read per O tile
                            + (1 + 2 * num_mixtures) * i_pad * o_pad * p_item
                            + nk * b_pad * o_pad * o_item),        # out written per K step
        )

        out_p = pl.pallas_call(
            kernel,
            out_shape=jax.ShapeDtypeStruct((b_pad, o_pad), out_dtype),
            grid_spec=pltpu.PrefetchScalarGridSpec(
                num_scalar_prefetch=0,
                grid=(no, nk, nb),              # B innermost: weight-tile reuse
                in_specs=[
                    pl.BlockSpec((tb, tk), lambda o, k, b: (b, k)),   # x
                    pl.BlockSpec((tk, to), lambda o, k, b: (k, o)),   # mean_eff
                    pl.BlockSpec((num_mixtures, tk, to),
                                 lambda o, k, b: (0, k, o)),          # scaled_std
                    pl.BlockSpec((num_mixtures, tk, to),
                                 lambda o, k, b: (0, k, o)),          # noise
                ],
                out_specs=pl.BlockSpec((tb, to), lambda o, k, b: (b, o)),
                scratch_shapes=scratch,
            ),
            compiler_params=pltpu.CompilerParams(
                # Only O may be parallel: K carries the accumulator and the
                # guarded last-K output store; B carries the weight tile.
                dimension_semantics=("parallel", "arbitrary", "arbitrary"),
                vmem_limit_bytes=vmem_limit,
            ),
            cost_estimate=cost,
        )(x_chunk, mean_p, sstd_p, noise_p)
        return out_p[:rows, :out_features]

    # Chunk the flattened batch so the (nB, TB, TO) accumulator scratch stays
    # bounded (critical on v7x with 64 MiB VMEM per TensorCore).
    max_rows = nb_cap * tb
    if batch <= max_rows:
        out2d = _run_chunk(x2d)
    else:
        out2d = jnp.concatenate(
            [_run_chunk(x2d[s:s + max_rows]) for s in range(0, batch, max_rows)],
            axis=0)

    return out2d.reshape(lead + (out_features,))


def _reference(x, means, log_stddevs, mixture_weights, noise_io):
    """Pure-JAX reference (unfolded math). means/log_stddevs: [M, O, I];
    noise_io: [M, I, O] (the kernel's noise layout)."""
    mean_io = jnp.transpose(means, (0, 2, 1))
    std_io = jnp.exp(jnp.transpose(log_stddevs, (0, 2, 1)))
    w_eff = jnp.sum(mixture_weights[:, None, None]
                    * (mean_io + std_io * noise_io), axis=0)       # [I, O]
    return jnp.einsum("...i,io->...o", x, w_eff)


if __name__ == "__main__":
    key = jax.random.PRNGKey(0)

    # --- Small demo consistent with the module defaults ---------------------
    in_features, out_features, num_mixtures = 32, 16, 5
    mean_init, std_init = 0.0, 1.0

    means = jnp.full((num_mixtures, out_features, in_features), mean_init,
                     dtype=jnp.float32)
    log_stddevs = jnp.full((num_mixtures, out_features, in_features),
                           math.log(std_init), dtype=jnp.float32)
    mixture_weights = jnp.full((num_mixtures,), 1.0 / num_mixtures,
                               dtype=jnp.float32)

    kx, kn, kbig = jax.random.split(key, 3)
    x = jax.random.normal(kx, (2, 8, in_features), dtype=jnp.float32)
    noise = jax.random.normal(kn, (num_mixtures, in_features, out_features),
                              dtype=jnp.float32)
    ref = _reference(x, means, log_stddevs, mixture_weights, noise)

    # f32 params / f32 matmul
    mean_f32, sstd_f32 = prepare_params(means, log_stddevs, mixture_weights,
                                        param_dtype=jnp.float32)
    out_f32 = mixture_gaussian_linear(x, mean_f32, sstd_f32, noise=noise,
                                      compute_dtype=jnp.float32)
    # bf16 params / bf16 matmul (intentional precision trade-off: halves the
    # dominant HBM streams; accumulation stays f32)
    mean_bf, sstd_bf = prepare_params(means, log_stddevs, mixture_weights,
                                      param_dtype=jnp.bfloat16)
    out_bf16 = mixture_gaussian_linear(x, mean_bf, sstd_bf, noise=noise,
                                       compute_dtype=jnp.bfloat16)
    jax.block_until_ready((out_f32, out_bf16))
    assert out_f32.shape == (2, 8, out_features)
    assert out_bf16.shape == (2, 8, out_features)
    assert jnp.allclose(out_f32, ref, atol=1e-1, rtol=5e-2), "f32 mismatch"
    assert jnp.allclose(out_bf16, ref, atol=3e-1, rtol=1e-1), "bf16 mismatch"

    # --- Multi-tile check: unaligned dims, >1 tile on every grid axis -------
    M2, O2, I2, B2 = 5, 300, 640, 272
    k1, k2, k3, k4, k5 = jax.random.split(kbig, 5)
    means2 = 0.1 * jax.random.normal(k1, (M2, O2, I2), dtype=jnp.float32)
    logstd2 = -1.0 + 0.1 * jax.random.normal(k2, (M2, O2, I2), dtype=jnp.float32)
    mw2 = jax.nn.softmax(jax.random.normal(k3, (M2,), dtype=jnp.float32))
    x2 = jax.random.normal(k4, (B2, I2), dtype=jnp.float32)
    noise2 = jax.random.normal(k5, (M2, I2, O2), dtype=jnp.float32)
    ref2 = _reference(x2, means2, logstd2, mw2, noise2)

    mean2_p, sstd2_p = prepare_params(means2, logstd2, mw2,
                                      param_dtype=jnp.float32)
    out2 = mixture_gaussian_linear(x2, mean2_p, sstd2_p, noise=noise2,
                                   compute_dtype=jnp.float32)
    out2 = jax.block_until_ready(out2)
    assert out2.shape == (B2, O2)
    assert jnp.allclose(out2, ref2, atol=5e-1, rtol=5e-2), "multi-tile mismatch"

    # Same problem, but force the batch-chunking path (bounded accumulator).
    out2c = mixture_gaussian_linear(x2, mean2_p, sstd2_p, noise=noise2,
                                    compute_dtype=jnp.float32, nb_cap=1)
    out2c = jax.block_until_ready(out2c)
    assert jnp.allclose(out2c, ref2, atol=5e-1, rtol=5e-2), "chunked mismatch"

    print("KERNEL_OK")
</pallas_src>

<mosaic_0001>
module attributes {stable_mosaic.version = 11 : i64} {
  func.func @_lambda_(%arg0: i32, %arg1: i32, %arg2: i32, %arg3: memref<16x128xf32, #tpu.memory_space<vmem>>, %arg4: memref<128x128xf32, #tpu.memory_space<vmem>>, %arg5: memref<5x128x128xf32, #tpu.memory_space<vmem>>, %arg6: memref<5x128x128xf32, #tpu.memory_space<vmem>>, %arg7: memref<16x128xf32, #tpu.memory_space<vmem>>, %arg8: memref<128x128xf32, #tpu.memory_space<vmem>>) attributes {dimension_semantics = [#tpu.dimension_semantics<parallel>, #tpu.dimension_semantics<arbitrary>, #tpu.dimension_semantics<arbitrary>], iteration_bounds = array<i64: 1, 1, 1>, scalar_prefetch = 0 : i64, scratch_operands = 1 : i64, tpu.core_type = #tpu.core_type<tc>, window_params = [{transform_indices = @transform_0, window_bounds = array<i64: 16, 128>}, {transform_indices = @transform_1, window_bounds = array<i64: 128, 128>}, {transform_indices = @transform_2, window_bounds = array<i64: 5, 128, 128>}, {transform_indices = @transform_3, window_bounds = array<i64: 5, 128, 128>}, {transform_indices = @transform_4, window_bounds = array<i64: 16, 128>}]} {
    %c0_i32 = arith.constant 0 : i32
    %0 = arith.cmpi eq, %arg2, %c0_i32 : i32
    %1 = arith.extui %0 : i1 to i32
    %c0_i32_0 = arith.constant 0 : i32
    %2 = arith.cmpi ne, %1, %c0_i32_0 : i32
    scf.if %2 {
      %c0_6 = arith.constant 0 : index
      %c0_7 = arith.constant 0 : index
      %7 = vector.load %arg4[%c0_6, %c0_7] : memref<128x128xf32, #tpu.memory_space<vmem>>, vector<128x128xf32>
      %c0_8 = arith.constant 0 : index
      %c0_9 = arith.constant 0 : index
      %c0_10 = arith.constant 0 : index
      %8 = vector.load %arg5[%c0_8, %c0_9, %c0_10] : memref<5x128x128xf32, #tpu.memory_space<vmem>>, vector<1x128x128xf32>
      %9 = vector.shape_cast %8 : vector<1x128x128xf32> to vector<128x128xf32>
      %c0_11 = arith.constant 0 : index
      %c0_12 = arith.constant 0 : index
      %c0_13 = arith.constant 0 : index
      %10 = vector.load %arg6[%c0_11, %c0_12, %c0_13] : memref<5x128x128xf32, #tpu.memory_space<vmem>>, vector<1x128x128xf32>
      %11 = vector.shape_cast %10 : vector<1x128x128xf32> to vector<128x128xf32>
      %12 = arith.mulf %9, %11 : vector<128x128xf32>
      %13 = arith.addf %7, %12 : vector<128x128xf32>
      %c1 = arith.constant 1 : index
      %c0_14 = arith.constant 0 : index
      %c0_15 = arith.constant 0 : index
      %14 = vector.load %arg5[%c1, %c0_14, %c0_15] : memref<5x128x128xf32, #tpu.memory_space<vmem>>, vector<1x128x128xf32>
      %15 = vector.shape_cast %14 : vector<1x128x128xf32> to vector<128x128xf32>
      %c1_16 = arith.constant 1 : index
      %c0_17 = arith.constant 0 : index
      %c0_18 = arith.constant 0 : index
      %16 = vector.load %arg6[%c1_16, %c0_17, %c0_18] : memref<5x128x128xf32, #tpu.memory_space<vmem>>, vector<1x128x128xf32>
      %17 = vector.shape_cast %16 : vector<1x128x128xf32> to vector<128x128xf32>
      %18 = arith.mulf %15, %17 : vector<128x128xf32>
      %19 = arith.addf %13, %18 : vector<128x128xf32>
      %c2 = arith.constant 2 : index
      %c0_19 = arith.constant 0 : index
      %c0_20 = arith.constant 0 : index
      %20 = vector.load %arg5[%c2, %c0_19, %c0_20] : memref<5x128x128xf32, #tpu.memory_space<vmem>>, vector<1x128x128xf32>
      %21 = vector.shape_cast %20 : vector<1x128x128xf32> to vector<128x128xf32>
      %c2_21 = arith.constant 2 : index
      %c0_22 = arith.constant 0 : index
      %c0_23 = arith.constant 0 : index
      %22 = vector.load %arg6[%c2_21, %c0_22, %c0_23] : memref<5x128x128xf32, #tpu.memory_space<vmem>>, vector<1x128x128xf32>
      %23 = vector.shape_cast %22 : vector<1x128x128xf32> to vector<128x128xf32>
      %24 = arith.mulf %21, %23 : vector<128x128xf32>
      %25 = arith.addf %19, %24 : vector<128x128xf32>
      %c3 = arith.constant 3 : index
      %c0_24 = arith.constant 0 : index
      %c0_25 = arith.constant 0 : index
      %26 = vector.load %arg5[%c3, %c0_24, %c0_25] : memref<5x128x128xf32, #tpu.memory_space<vmem>>, vector<1x128x128xf32>
      %27 = vector.shape_cast %26 : vector<1x128x128xf32> to vector<128x128xf32>
      %c3_26 = arith.constant 3 : index
      %c0_27 = arith.constant 0 : index
      %c0_28 = arith.constant 0 : index
      %28 = vector.load %arg6[%c3_26, %c0_27, %c0_28] : memref<5x128x128xf32, #tpu.memory_space<vmem>>, vector<1x128x128xf32>
      %29 = vector.shape_cast %28 : vector<1x128x128xf32> to vector<128x128xf32>
      %30 = arith.mulf %27, %29 : vector<128x128xf32>
      %31 = arith.addf %25, %30 : vector<128x128xf32>
      %c4 = arith.constant 4 : index
      %c0_29 = arith.constant 0 : index
      %c0_30 = arith.constant 0 : index
      %32 = vector.load %arg5[%c4, %c0_29, %c0_30] : memref<5x128x128xf32, #tpu.memory_space<vmem>>, vector<1x128x128xf32>
      %33 = vector.shape_cast %32 : vector<1x128x128xf32> to vector<128x128xf32>
      %c4_31 = arith.constant 4 : index
      %c0_32 = arith.constant 0 : index
      %c0_33 = arith.constant 0 : index
      %34 = vector.load %arg6[%c4_31, %c0_32, %c0_33] : memref<5x128x128xf32, #tpu.memory_space<vmem>>, vector<1x128x128xf32>
      %35 = vector.shape_cast %34 : vector<1x128x128xf32> to vector<128x128xf32>
      %36 = arith.mulf %33, %35 : vector<128x128xf32>
      %37 = arith.addf %31, %36 : vector<128x128xf32>
      %c0_34 = arith.constant 0 : index
      %c0_35 = arith.constant 0 : index
      %38 = vector.load %arg8[%c0_34, %c0_35] : memref<128x128xf32, #tpu.memory_space<vmem>>, vector<128x128xf32>
      tpu.vector_store %arg8[%c0_34, %c0_35], %37 {strides = array<i32>} : memref<128x128xf32, #tpu.memory_space<vmem>>, vector<128x128xf32>,
    } else {
    }
    %c0 = arith.constant 0 : index
    %c0_1 = arith.constant 0 : index
    %3 = vector.load %arg3[%c0, %c0_1] : memref<16x128xf32, #tpu.memory_space<vmem>>, vector<16x128xf32>
    %c0_2 = arith.constant 0 : index
    %c0_3 = arith.constant 0 : index
    %4 = vector.load %arg8[%c0_2, %c0_3] : memref<128x128xf32, #tpu.memory_space<vmem>>, vector<128x128xf32>
    %cst = arith.constant dense<0.000000e+00> : vector<16x128xf32>
    %5 = tpu.matmul %3, %4, %cst {dimension_numbers = #tpu.dot_dimension_numbers<[1], [0], [0], [1], [0, 0, 1, 1], [], []>} : vector<16x128xf32>, vector<128x128xf32>, vector<16x128xf32> -> vector<16x128xf32>
    %c0_4 = arith.constant 0 : index
    %c0_5 = arith.constant 0 : index
    %6 = vector.load %arg7[%c0_4, %c0_5] : memref<16x128xf32, #tpu.memory_space<vmem>>, vector<16x128xf32>
    tpu.vector_store %arg7[%c0_4, %c0_5], %5 {strides = array<i32>} : memref<16x128xf32, #tpu.memory_space<vmem>>, vector<16x128xf32>,
    return
  }
  func.func @transform_0(%arg0: i32, %arg1: i32, %arg2: i32) -> (i32, i32) {
    %c0_i32 = arith.constant 0 : i32
    return %arg2, %arg1 : i32, i32
  }
  func.func @transform_1(%arg0: i32, %arg1: i32, %arg2: i32) -> (i32, i32) {
    %c0_i32 = arith.constant 0 : i32
    return %arg1, %arg0 : i32, i32
  }
  func.func @transform_2(%arg0: i32, %arg1: i32, %arg2: i32) -> (i32, i32, i32) {
    %c0_i32 = arith.constant 0 : i32
    %c0_i32_0 = arith.constant 0 : i32
    return %c0_i32, %arg1, %arg0 : i32, i32, i32
  }
  func.func @transform_3(%arg0: i32, %arg1: i32, %arg2: i32) -> (i32, i32, i32) {
    %c0_i32 = arith.constant 0 : i32
    %c0_i32_0 = arith.constant 0 : i32
    return %c0_i32, %arg1, %arg0 : i32, i32, i32
  }
  func.func @transform_4(%arg0: i32, %arg1: i32, %arg2: i32) -> (i32, i32) {
    %c0_i32 = arith.constant 0 : i32
    return %arg2, %arg0 : i32, i32
  }
}

</mosaic_0001>

<bundles_post_ra>
// kernel: tpu_custom_call.1
= control target key start
LH: loop header
LB: loop body
LE: loop exit
PB: predicated region body
PF: predicated region fallthrough
CT: control target
= control target key end

     0   :  { %9 = vsyncpa [#allocation4], 0  ;;  %s781_s0 = inlined_call_operand.hbm [shape: f32[16,128], index: 0, kind: input, shape index: {}]   ;;  %s782_s1 = inlined_call_operand.hbm [shape: f32[128,128], index: 1, kind: input, shape index: {}]   ;;  %s783_s2 = inlined_call_operand.hbm [shape: f32[5,128,128], index: 2, kind: input, shape index: {}]   ;;  %s784_s3 = inlined_call_operand.hbm [shape: f32[5,128,128], index: 3, kind: input, shape index: {}]   ;;  %s785_s4 = inlined_call_operand.hbm [shape: f32[16,128], index: 4, kind: output, shape index: {}]  }
   0x1   :  { %10 = vsyncpa [#allocation7], 0 }
   0x2   :  { %11 = vsyncpa [#allocation10], 0 }
   0x3   :  { %12 = vsyncpa [#allocation5], 0  ;;  %s719_s15 = smov [#allocation6]   ;;  %s720_s17 = smov [#allocation3]  }
   0x4   :  { %s30_s16 = sshll.u32 %s719_s15, 4  ;;  %s18_s18 = sshll.u32 %s720_s17, 4  ;;  %s31_s16 = int_to_ptr.vmem [resolvable:$true] %s30_s16  ;;  %s19_s18 = int_to_ptr.vmem [resolvable:$true] %s18_s18 }
   0x5   :  { %s619_s19 = scalar_lea.vmem %s31_s16, 2048  ;;  %p624_p1 = scmp.lt.s32.totalorder %s31_s16, %s31_s16 }
   0x6   :  { %p620_p0 = scmp.ne.s32.totalorder %s31_s16, %s619_s19  ;;  %p625_p2 = scmp.lt.s32.totalorder %s619_s19, %s619_s19 }
   0x8   :  { %p626_p3 = por %p625_p2, %p624_p1 }
   0xa   :  { %p627_p4 = pnand %p626_p3, %p620_p0 }
   0xc   :  { %630 = shalt.err (!%p627_p4)
}
   0xd   :  { %s721_s20 = smov 128   ;;  %s722_s21 = smov 8  }
   0xe   :  { %36 = dma.hbm_to_vmem [thread:$0]  %s782_s1, 2048, %s31_s16, [#allocation7], %s721_s20, %s721_s20, %s722_s21  }
   0xf   :  { %s639_s24 = scalar_lea.vmem %s19_s18, 256  ;;  %p644_p6 = scmp.lt.s32.totalorder %s19_s18, %s19_s18 }
  0x10   :  { %p640_p5 = scmp.ne.s32.totalorder %s19_s18, %s639_s24  ;;  %p645_p7 = scmp.lt.s32.totalorder %s639_s24, %s639_s24 }
  0x12   :  { %p646_p8 = por %p645_p7, %p644_p6 }
  0x14   :  { %p647_p9 = pnand %p646_p8, %p640_p5 }
  0x16   :  { %650 = shalt.err (!%p647_p9)
}
  0x17   :  { %24 = dma.hbm_to_vmem [thread:$0]  %s781_s0, 256, %s19_s18, [#allocation4], %s721_s20, %s721_s20, %s722_s21  }
  0x18   :  { %s723_s27 = smov [#allocation8]   ;;  %s724_s29 = smov [#allocation9]  }
  0x19   :  { %s42_s28 = sshll.u32 %s723_s27, 4  ;;  %s54_s30 = sshll.u32 %s724_s29, 4  ;;  %s43_s28 = int_to_ptr.vmem [resolvable:$true] %s42_s28  ;;  %s55_s30 = int_to_ptr.vmem [resolvable:$true] %s54_s30 }
  0x1a   :  { %s659_s1 = scalar_lea.vmem %s43_s28, 10240  ;;  %p664_p11 = scmp.lt.s32.totalorder %s43_s28, %s43_s28 }
  0x1b   :  { %p660_p10 = scmp.ne.s32.totalorder %s43_s28, %s659_s1  ;;  %p665_p12 = scmp.lt.s32.totalorder %s659_s1, %s659_s1 }
  0x1d   :  { %p666_p13 = por %p665_p12, %p664_p11 }
  0x1f   :  { %p667_p0 = pnand %p666_p13, %p660_p10 }
  0x21   :  { %670 = shalt.err (!%p667_p0)
}
  0x22   :  { %48 = dma.hbm_to_vmem [thread:$0]  %s783_s2, 10240, %s43_s28, [#allocation7], %s721_s20, %s721_s20, %s722_s21  }
  0x23   :  { %s679_s0 = scalar_lea.vmem %s55_s30, 10240  ;;  %p684_p2 = scmp.lt.s32.totalorder %s55_s30, %s55_s30 }
  0x24   :  { %p680_p1 = scmp.ne.s32.totalorder %s55_s30, %s679_s0  ;;  %p685_p3 = scmp.lt.s32.totalorder %s679_s0, %s679_s0 }
  0x26   :  { %p686_p4 = por %p685_p3, %p684_p2 }
  0x28   :  { %p687_p5 = pnand %p686_p4, %p680_p1 }
  0x2a   :  { %690 = shalt.err (!%p687_p5)
}
  0x2b   :  { %60 = dma.hbm_to_vmem [thread:$0]  %s784_s3, 10240, %s55_s30, [#allocation10], %s721_s20, %s721_s20, %s722_s21  }
  0x2c   :  { %711 = dma.done.wait [#allocation4], 256  }
  0x2d   :  { %712 = vsyncadd [#allocation4], 4294967040 }
  0x2e   :  { %713 = dma.done.wait [#allocation7], 12288  }
  0x2f   :  { %714 = vsyncadd [#allocation7], 4294955008 }
  0x30   :  { %715 = dma.done.wait [#allocation10], 10240  }
  0x31   :  { %716 = vsyncadd [#allocation10], 4294957056  ;;  %v92_v0 = vld [vmem:[#allocation6 + $0x78] sm:$0xff]  ;;  %v91_v15 = vld [vmem:[#allocation6 + $0x70] sm:$0xff]  ;;  %s725_s2 = smov [#allocation11]  }
  0x32   :  { %v108_v1 = vld [vmem:[#allocation8 + $0x78] sm:$0xff]  ;;  %v107_v16 = vld [vmem:[#allocation8 + $0x70] sm:$0xff]  ;;  %v90_v34 = vld [vmem:[#allocation6 + $0x68] sm:$0xff]  ;;  %s537_s3 = sshll.u32 %s725_s2, 4  ;;  %s538_s3 = int_to_ptr.vmem [resolvable:$true] %s537_s3 }
  0x33   :  { %v124_v2 = vld [vmem:[#allocation9 + $0x78] sm:$0xff]  ;;  %v123_v17 = vld [vmem:[#allocation9 + $0x70] sm:$0xff]  ;;  %v106_v35 = vld [vmem:[#allocation8 + $0x68] sm:$0xff]  ;;  %s691_s9 = scalar_lea.vmem %s538_s3, 256  ;;  %p696_p7 = scmp.lt.s32.totalorder %s538_s3, %s538_s3 }
  0x34   :  { %v140_v3 = vmul.f32 %v124_v2, %v108_v1  ;;  %v173_v4 = vld [vmem:[#allocation8 + $0xf8] sm:$0xff]  ;;  %v172_v18 = vld [vmem:[#allocation8 + $0xf0] sm:$0xff]  ;;  %v139_v21 = vmul.f32 %v123_v17, %v107_v16  ;;  %v122_v37 = vld [vmem:[#allocation9 + $0x68] sm:$0xff]  ;;  %p692_p6 = scmp.ne.s32.totalorder %s538_s3, %s691_s9  ;;  %p697_p8 = scmp.lt.s32.totalorder %s691_s9, %s691_s9 }
  0x35   :  { %v190_v5 = vld [vmem:[#allocation9 + $0xf8] sm:$0xff]  ;;  %v189_v22 = vld [vmem:[#allocation9 + $0xf0] sm:$0xff]  ;;  %v171_v38 = vld [vmem:[#allocation8 + $0xe8] sm:$0xff]  ;;  %v138_v42 = vmul.f32 %v122_v37, %v106_v35 }
  0x36   :  { %v239_v6 = vld [vmem:[#allocation8 + $0x178] sm:$0xff]  ;;  %v206_v7 = vmul.f32 %v190_v5, %v173_v4  ;;  %v156_v11 = vadd.f32 %v140_v3, %v92_v0  ;;  %v238_v23 = vld [vmem:[#allocation8 + $0x170] sm:$0xff]  ;;  %v205_v25 = vmul.f32 %v189_v22, %v172_v18  ;;  %v155_v31 = vadd.f32 %v139_v21, %v91_v15  ;;  %v188_v39 = vld [vmem:[#allocation9 + $0xe8] sm:$0xff]  ;;  %p698_p9 = por %p697_p8, %p696_p7 }
  0x37   :  { %v256_v8 = vld [vmem:[#allocation9 + $0x178] sm:$0xff]  ;;  %v255_v24 = vld [vmem:[#allocation9 + $0x170] sm:$0xff]  ;;  %v204_v43 = vmul.f32 %v188_v39, %v171_v38  ;;  %v237_v44 = vld [vmem:[#allocation8 + $0x168] sm:$0xff]  ;;  %v154_v53 = vadd.f32 %v138_v42, %v90_v34 }
  0x38   :  { %v305_v9 = vld [vmem:[#allocation8 + $0x1f8] sm:$0xff]  ;;  %v272_v12 = vmul.f32 %v256_v8, %v239_v6  ;;  %v222_v19 = vadd.f32 %v206_v7, %v156_v11  ;;  %v304_v26 = vld [vmem:[#allocation8 + $0x1f0] sm:$0xff]  ;;  %v271_v32 = vmul.f32 %v255_v24, %v238_v23  ;;  %v221_v41 = vadd.f32 %v205_v25, %v155_v31  ;;  %v254_v45 = vld [vmem:[#allocation9 + $0x168] sm:$0xff]  ;;  %p699_p10 = pnand %p698_p9, %p692_p6 }
  0x39   :  { %v322_v10 = vld [vmem:[#allocation9 + $0x1f8] sm:$0xff]  ;;  %v321_v27 = vld [vmem:[#allocation9 + $0x1f0] sm:$0xff]  ;;  %v303_v46 = vld [vmem:[#allocation8 + $0x1e8] sm:$0xff]  ;;  %v270_v54 = vmul.f32 %v254_v45, %v237_v44  ;;  %v220_v63 = vadd.f32 %v204_v43, %v154_v53 }
  0x3a   :  { %v371_v13 = vld [vmem:[#allocation8 + $0x278] sm:$0xff]  ;;  %v338_v20 = vmul.f32 %v322_v10, %v305_v9  ;;  %v370_v28 = vld [vmem:[#allocation8 + $0x270] sm:$0xff]  ;;  %v288_v29 = vadd.f32 %v272_v12, %v222_v19  ;;  %v337_v36 = vmul.f32 %v321_v27, %v304_v26  ;;  %v320_v48 = vld [vmem:[#allocation9 + $0x1e8] sm:$0xff]  ;;  %v287_v52 = vadd.f32 %v271_v32, %v221_v41 }
  0x3b   :  { %v388_v14 = vld [vmem:[#allocation9 + $0x278] sm:$0xff]  ;;  %v387_v33 = vld [vmem:[#allocation9 + $0x270] sm:$0xff]  ;;  %v369_v49 = vld [vmem:[#allocation8 + $0x268] sm:$0xff]  ;;  %v336_v0 = vmul.f32 %v320_v48, %v303_v46  ;;  %v286_v11 = vadd.f32 %v270_v54, %v220_v63 }
  0x3c   :  { %v404_v30 = vmul.f32 %v388_v14, %v371_v13  ;;  %v354_v40 = vadd.f32 %v338_v20, %v288_v29  ;;  %v403_v47 = vmul.f32 %v387_v33, %v370_v28  ;;  %v386_v50 = vld [vmem:[#allocation9 + $0x268] sm:$0xff]  ;;  %v89_v55 = vld [vmem:[#allocation6 + $0x60] sm:$0xff]  ;;  %v353_v62 = vadd.f32 %v337_v36, %v287_v52  ;;  %v88_v9 = vld [vmem:[#allocation6 + $0x58] sm:$0xff] }
  0x3d   :  { %v105_v56 = vld [vmem:[#allocation8 + $0x60] sm:$0xff]  ;;  %v402_v12 = vmul.f32 %v386_v50, %v369_v49  ;;  %v104_v13 = vld [vmem:[#allocation8 + $0x58] sm:$0xff]  ;;  %v352_v22 = vadd.f32 %v336_v0, %v286_v11  ;;  %v87_v32 = vld [vmem:[#allocation6 + $0x50] sm:$0xff] }
  0x3e   :  { %v420_v51 = vadd.f32 %v404_v30, %v354_v40  ;;  %v121_v57 = vld [vmem:[#allocation9 + $0x60] sm:$0xff]  ;;  %v419_v10 = vadd.f32 %v403_v47, %v353_v62  ;;  %v120_v14 = vld [vmem:[#allocation9 + $0x58] sm:$0xff]  ;;  %v103_v33 = vld [vmem:[#allocation8 + $0x50] sm:$0xff] }
  0x3f   :  { %v137_v58 = vmul.f32 %v121_v57, %v105_v56  ;;  %v170_v59 = vld [vmem:[#allocation8 + $0xe0] sm:$0xff]  ;;  %v169_v15 = vld [vmem:[#allocation8 + $0xd8] sm:$0xff]  ;;  %v136_v18 = vmul.f32 %v120_v14, %v104_v13  ;;  %v418_v34 = vadd.f32 %v402_v12, %v352_v22  ;;  %v119_v36 = vld [vmem:[#allocation9 + $0x50] sm:$0xff] }
  0x40   :  { %v187_v60 = vld [vmem:[#allocation9 + $0xe0] sm:$0xff]  ;;  %569 = vmatprep.subr.mxu0 %v420_v51  ;;  %v186_v19 = vld [vmem:[#allocation9 + $0xd8] sm:$0xff]  ;;  %v168_v37 = vld [vmem:[#allocation8 + $0xd0] sm:$0xff]  ;;  %v135_v41 = vmul.f32 %v119_v36, %v103_v33 }
  0x41   :  { %v236_v61 = vld [vmem:[#allocation8 + $0x160] sm:$0xff]  ;;  %v203_v1 = vmul.f32 %v187_v60, %v170_v59  ;;  %570 = vmatpush3.msra.mxu0 %v420_v51  ;;  %v153_v5 = vadd.f32 %v137_v58, %v89_v55  ;;  %v235_v20 = vld [vmem:[#allocation8 + $0x158] sm:$0xff]  ;;  %v202_v23 = vmul.f32 %v186_v19, %v169_v15  ;;  %v152_v29 = vadd.f32 %v136_v18, %v88_v9  ;;  %v185_v38 = vld [vmem:[#allocation9 + $0xd0] sm:$0xff] }
  0x42   :  { %v253_v2 = vld [vmem:[#allocation9 + $0x160] sm:$0xff]  ;;  %v252_v21 = vld [vmem:[#allocation9 + $0x158] sm:$0xff]  ;;  %571 = vmatprep.subr.mxu0 %v419_v10  ;;  %v201_v42 = vmul.f32 %v185_v38, %v168_v37  ;;  %v234_v43 = vld [vmem:[#allocation8 + $0x150] sm:$0xff]  ;;  %v151_v52 = vadd.f32 %v135_v41, %v87_v32 }
  0x43   :  { %v302_v3 = vld [vmem:[#allocation8 + $0x1e0] sm:$0xff]  ;;  %v269_v6 = vmul.f32 %v253_v2, %v236_v61  ;;  %v219_v16 = vadd.f32 %v203_v1, %v153_v5  ;;  %v301_v24 = vld [vmem:[#allocation8 + $0x1d8] sm:$0xff]  ;;  %572 = vmatpush3.msra.mxu0 %v419_v10  ;;  %v268_v30 = vmul.f32 %v252_v21, %v235_v20  ;;  %v218_v40 = vadd.f32 %v202_v23, %v152_v29  ;;  %v251_v44 = vld [vmem:[#allocation9 + $0x150] sm:$0xff] }
  0x44   :  { %v319_v4 = vld [vmem:[#allocation9 + $0x1e0] sm:$0xff]  ;;  %v318_v25 = vld [vmem:[#allocation9 + $0x1d8] sm:$0xff]  ;;  %v300_v45 = vld [vmem:[#allocation8 + $0x1d0] sm:$0xff]  ;;  %573 = vmatprep.subr.mxu0 %v418_v34  ;;  %v267_v53 = vmul.f32 %v251_v44, %v234_v43  ;;  %v217_v62 = vadd.f32 %v201_v42, %v151_v52 }
  0x45   :  { %v368_v7 = vld [vmem:[#allocation8 + $0x260] sm:$0xff]  ;;  %v335_v17 = vmul.f32 %v319_v4, %v302_v3  ;;  %v367_v26 = vld [vmem:[#allocation8 + $0x258] sm:$0xff]  ;;  %v285_v27 = vadd.f32 %v269_v6, %v219_v16  ;;  %v334_v35 = vmul.f32 %v318_v25, %v301_v24  ;;  %v317_v47 = vld [vmem:[#allocation9 + $0x1d0] sm:$0xff]  ;;  %574 = vmatpush3.msra.mxu0 %v418_v34  ;;  %v284_v51 = vadd.f32 %v268_v30, %v218_v40 }
  0x46   :  { %v385_v8 = vld [vmem:[#allocation9 + $0x260] sm:$0xff]  ;;  %v384_v31 = vld [vmem:[#allocation9 + $0x258] sm:$0xff]  ;;  %v366_v48 = vld [vmem:[#allocation8 + $0x250] sm:$0xff]  ;;  %v333_v63 = vmul.f32 %v317_v47, %v300_v45  ;;  %v283_v10 = vadd.f32 %v267_v53, %v217_v62 }
  0x47   :  { %v401_v28 = vmul.f32 %v385_v8, %v368_v7  ;;  %v351_v39 = vadd.f32 %v335_v17, %v285_v27  ;;  %v400_v46 = vmul.f32 %v384_v31, %v367_v26  ;;  %v383_v49 = vld [vmem:[#allocation9 + $0x250] sm:$0xff]  ;;  %v86_v54 = vld [vmem:[#allocation6 + $0x48] sm:$0xff]  ;;  %v350_v61 = vadd.f32 %v334_v35, %v284_v51  ;;  %v85_v8 = vld [vmem:[#allocation6 + $0x40] sm:$0xff] }
  0x48   :  { %v102_v55 = vld [vmem:[#allocation8 + $0x48] sm:$0xff]  ;;  %v399_v11 = vmul.f32 %v383_v49, %v366_v48  ;;  %v101_v12 = vld [vmem:[#allocation8 + $0x40] sm:$0xff]  ;;  %v349_v21 = vadd.f32 %v333_v63, %v283_v10  ;;  %v84_v31 = vld [vmem:[#allocation6 + $0x38] sm:$0xff] }
  0x49   :  { %v417_v50 = vadd.f32 %v401_v28, %v351_v39  ;;  %v118_v56 = vld [vmem:[#allocation9 + $0x48] sm:$0xff]  ;;  %v416_v9 = vadd.f32 %v400_v46, %v350_v61  ;;  %v117_v13 = vld [vmem:[#allocation9 + $0x40] sm:$0xff]  ;;  %v100_v32 = vld [vmem:[#allocation8 + $0x38] sm:$0xff] }
  0x4a   :  { %v134_v57 = vmul.f32 %v118_v56, %v102_v55  ;;  %v167_v58 = vld [vmem:[#allocation8 + $0xc8] sm:$0xff]  ;;  %v166_v14 = vld [vmem:[#allocation8 + $0xc0] sm:$0xff]  ;;  %v133_v17 = vmul.f32 %v117_v13, %v101_v12  ;;  %v415_v33 = vadd.f32 %v399_v11, %v349_v21  ;;  %v116_v35 = vld [vmem:[#allocation9 + $0x38] sm:$0xff] }
  0x4b   :  { %v184_v59 = vld [vmem:[#allocation9 + $0xc8] sm:$0xff]  ;;  %575 = vmatprep.subr.mxu0 %v417_v50  ;;  %v183_v18 = vld [vmem:[#allocation9 + $0xc0] sm:$0xff]  ;;  %v165_v36 = vld [vmem:[#allocation8 + $0xb8] sm:$0xff]  ;;  %v132_v40 = vmul.f32 %v116_v35, %v100_v32 }
  0x4c   :  { %v233_v60 = vld [vmem:[#allocation8 + $0x148] sm:$0xff]  ;;  %v200_v0 = vmul.f32 %v184_v59, %v167_v58  ;;  %576 = vmatpush3.msra.mxu0 %v417_v50  ;;  %v150_v4 = vadd.f32 %v134_v57, %v86_v54  ;;  %v232_v19 = vld [vmem:[#allocation8 + $0x140] sm:$0xff]  ;;  %v199_v22 = vmul.f32 %v183_v18, %v166_v14  ;;  %v149_v28 = vadd.f32 %v133_v17, %v85_v8  ;;  %v182_v37 = vld [vmem:[#allocation9 + $0xb8] sm:$0xff] }
  0x4d   :  { %v250_v1 = vld [vmem:[#allocation9 + $0x148] sm:$0xff]  ;;  %v249_v20 = vld [vmem:[#allocation9 + $0x140] sm:$0xff]  ;;  %577 = vmatprep.subr.mxu0 %v416_v9  ;;  %v198_v41 = vmul.f32 %v182_v37, %v165_v36  ;;  %v231_v42 = vld [vmem:[#allocation8 + $0x138] sm:$0xff]  ;;  %v148_v51 = vadd.f32 %v132_v40, %v84_v31 }
  0x4e   :  { %v299_v2 = vld [vmem:[#allocation8 + $0x1c8] sm:$0xff]  ;;  %v266_v5 = vmul.f32 %v250_v1, %v233_v60  ;;  %v216_v15 = vadd.f32 %v200_v0, %v150_v4  ;;  %v298_v23 = vld [vmem:[#allocation8 + $0x1c0] sm:$0xff]  ;;  %578 = vmatpush3.msra.mxu0 %v416_v9  ;;  %v265_v29 = vmul.f32 %v249_v20, %v232_v19  ;;  %v215_v39 = vadd.f32 %v199_v22, %v149_v28  ;;  %v248_v43 = vld [vmem:[#allocation9 + $0x138] sm:$0xff] }
  0x4f   :  { %v316_v3 = vld [vmem:[#allocation9 + $0x1c8] sm:$0xff]  ;;  %v315_v24 = vld [vmem:[#allocation9 + $0x1c0] sm:$0xff]  ;;  %v297_v44 = vld [vmem:[#allocation8 + $0x1b8] sm:$0xff]  ;;  %579 = vmatprep.subr.mxu0 %v415_v33  ;;  %v264_v52 = vmul.f32 %v248_v43, %v231_v42  ;;  %v214_v61 = vadd.f32 %v198_v41, %v148_v51 }
  0x50   :  { %v365_v6 = vld [vmem:[#allocation8 + $0x248] sm:$0xff]  ;;  %v332_v16 = vmul.f32 %v316_v3, %v299_v2  ;;  %v364_v25 = vld [vmem:[#allocation8 + $0x240] sm:$0xff]  ;;  %v282_v26 = vadd.f32 %v266_v5, %v216_v15  ;;  %v331_v34 = vmul.f32 %v315_v24, %v298_v23  ;;  %v314_v46 = vld [vmem:[#allocation9 + $0x1b8] sm:$0xff]  ;;  %580 = vmatpush3.msra.mxu0 %v415_v33  ;;  %v281_v50 = vadd.f32 %v265_v29, %v215_v39 }
  0x51   :  { %v382_v7 = vld [vmem:[#allocation9 + $0x248] sm:$0xff]  ;;  %v381_v30 = vld [vmem:[#allocation9 + $0x240] sm:$0xff]  ;;  %v363_v47 = vld [vmem:[#allocation8 + $0x238] sm:$0xff]  ;;  %v330_v62 = vmul.f32 %v314_v46, %v297_v44  ;;  %v280_v9 = vadd.f32 %v264_v52, %v214_v61 }
  0x52   :  { %v398_v27 = vmul.f32 %v382_v7, %v365_v6  ;;  %v348_v38 = vadd.f32 %v332_v16, %v282_v26  ;;  %v397_v45 = vmul.f32 %v381_v30, %v364_v25  ;;  %v380_v48 = vld [vmem:[#allocation9 + $0x238] sm:$0xff]  ;;  %v83_v53 = vld [vmem:[#allocation6 + $0x30] sm:$0xff]  ;;  %v347_v60 = vadd.f32 %v331_v34, %v281_v50  ;;  %v82_v7 = vld [vmem:[#allocation6 + $0x28] sm:$0xff] }
  0x53   :  { %v99_v54 = vld [vmem:[#allocation8 + $0x30] sm:$0xff]  ;;  %v396_v10 = vmul.f32 %v380_v48, %v363_v47  ;;  %v98_v11 = vld [vmem:[#allocation8 + $0x28] sm:$0xff]  ;;  %v346_v20 = vadd.f32 %v330_v62, %v280_v9  ;;  %v81_v30 = vld [vmem:[#allocation6 + $0x20] sm:$0xff] }
  0x54   :  { %v414_v49 = vadd.f32 %v398_v27, %v348_v38  ;;  %v115_v55 = vld [vmem:[#allocation9 + $0x30] sm:$0xff]  ;;  %v413_v8 = vadd.f32 %v397_v45, %v347_v60  ;;  %v114_v12 = vld [vmem:[#allocation9 + $0x28] sm:$0xff]  ;;  %v97_v31 = vld [vmem:[#allocation8 + $0x20] sm:$0xff] }
  0x55   :  { %v131_v56 = vmul.f32 %v115_v55, %v99_v54  ;;  %v164_v57 = vld [vmem:[#allocation8 + $0xb0] sm:$0xff]  ;;  %v163_v13 = vld [vmem:[#allocation8 + $0xa8] sm:$0xff]  ;;  %v130_v16 = vmul.f32 %v114_v12, %v98_v11  ;;  %v412_v32 = vadd.f32 %v396_v10, %v346_v20  ;;  %v113_v34 = vld [vmem:[#allocation9 + $0x20] sm:$0xff] }
  0x56   :  { %v181_v58 = vld [vmem:[#allocation9 + $0xb0] sm:$0xff]  ;;  %581 = vmatprep.subr.mxu0 %v414_v49  ;;  %v180_v17 = vld [vmem:[#allocation9 + $0xa8] sm:$0xff]  ;;  %v162_v35 = vld [vmem:[#allocation8 + $0xa0] sm:$0xff]  ;;  %v129_v39 = vmul.f32 %v113_v34, %v97_v31 }
  0x57   :  { %v230_v59 = vld [vmem:[#allocation8 + $0x130] sm:$0xff]  ;;  %v197_v63 = vmul.f32 %v181_v58, %v164_v57  ;;  %582 = vmatpush3.msra.mxu0 %v414_v49  ;;  %v147_v3 = vadd.f32 %v131_v56, %v83_v53  ;;  %v229_v18 = vld [vmem:[#allocation8 + $0x128] sm:$0xff]  ;;  %v196_v21 = vmul.f32 %v180_v17, %v163_v13  ;;  %v146_v27 = vadd.f32 %v130_v16, %v82_v7  ;;  %v179_v36 = vld [vmem:[#allocation9 + $0xa0] sm:$0xff] }
  0x58   :  { %v247_v0 = vld [vmem:[#allocation9 + $0x130] sm:$0xff]  ;;  %v246_v19 = vld [vmem:[#allocation9 + $0x128] sm:$0xff]  ;;  %583 = vmatprep.subr.mxu0 %v413_v8  ;;  %v195_v40 = vmul.f32 %v179_v36, %v162_v35  ;;  %v228_v41 = vld [vmem:[#allocation8 + $0x120] sm:$0xff]  ;;  %v145_v50 = vadd.f32 %v129_v39, %v81_v30 }
  0x59   :  { %v296_v1 = vld [vmem:[#allocation8 + $0x1b0] sm:$0xff]  ;;  %v263_v4 = vmul.f32 %v247_v0, %v230_v59  ;;  %v213_v14 = vadd.f32 %v197_v63, %v147_v3  ;;  %v295_v22 = vld [vmem:[#allocation8 + $0x1a8] sm:$0xff]  ;;  %584 = vmatpush3.msra.mxu0 %v413_v8  ;;  %v262_v28 = vmul.f32 %v246_v19, %v229_v18  ;;  %v212_v38 = vadd.f32 %v196_v21, %v146_v27  ;;  %v245_v42 = vld [vmem:[#allocation9 + $0x120] sm:$0xff] }
  0x5a   :  { %v313_v2 = vld [vmem:[#allocation9 + $0x1b0] sm:$0xff]  ;;  %v312_v23 = vld [vmem:[#allocation9 + $0x1a8] sm:$0xff]  ;;  %v294_v43 = vld [vmem:[#allocation8 + $0x1a0] sm:$0xff]  ;;  %585 = vmatprep.subr.mxu0 %v412_v32  ;;  %v261_v51 = vmul.f32 %v245_v42, %v228_v41  ;;  %v211_v60 = vadd.f32 %v195_v40, %v145_v50 }
  0x5b   :  { %v362_v5 = vld [vmem:[#allocation8 + $0x230] sm:$0xff]  ;;  %v329_v15 = vmul.f32 %v313_v2, %v296_v1  ;;  %v361_v24 = vld [vmem:[#allocation8 + $0x228] sm:$0xff]  ;;  %v279_v25 = vadd.f32 %v263_v4, %v213_v14  ;;  %v328_v33 = vmul.f32 %v312_v23, %v295_v22  ;;  %v311_v45 = vld [vmem:[#allocation9 + $0x1a0] sm:$0xff]  ;;  %586 = vmatpush3.msra.mxu0 %v412_v32  ;;  %v278_v49 = vadd.f32 %v262_v28, %v212_v38 }
  0x5c   :  { %v379_v6 = vld [vmem:[#allocation9 + $0x230] sm:$0xff]  ;;  %v378_v29 = vld [vmem:[#allocation9 + $0x228] sm:$0xff]  ;;  %v360_v46 = vld [vmem:[#allocation8 + $0x220] sm:$0xff]  ;;  %v327_v61 = vmul.f32 %v311_v45, %v294_v43  ;;  %v277_v8 = vadd.f32 %v261_v51, %v211_v60 }
  0x5d   :  { %v395_v26 = vmul.f32 %v379_v6, %v362_v5  ;;  %v345_v37 = vadd.f32 %v329_v15, %v279_v25  ;;  %v394_v44 = vmul.f32 %v378_v29, %v361_v24  ;;  %v377_v47 = vld [vmem:[#allocation9 + $0x220] sm:$0xff]  ;;  %v80_v52 = vld [vmem:[#allocation6 + $0x18] sm:$0xff]  ;;  %v344_v59 = vadd.f32 %v328_v33, %v278_v49  ;;  %v79_v6 = vld [vmem:[#allocation6 + $0x10] sm:$0xff] }
  0x5e   :  { %v96_v53 = vld [vmem:[#allocation8 + $0x18] sm:$0xff]  ;;  %v393_v9 = vmul.f32 %v377_v47, %v360_v46  ;;  %v95_v10 = vld [vmem:[#allocation8 + $0x10] sm:$0xff]  ;;  %v343_v19 = vadd.f32 %v327_v61, %v277_v8  ;;  %v78_v29 = vld [vmem:[#allocation6 + $0x8] sm:$0xff] }
  0x5f   :  { %v411_v48 = vadd.f32 %v395_v26, %v345_v37  ;;  %v112_v54 = vld [vmem:[#allocation9 + $0x18] sm:$0xff]  ;;  %v410_v7 = vadd.f32 %v394_v44, %v344_v59  ;;  %v111_v11 = vld [vmem:[#allocation9 + $0x10] sm:$0xff]  ;;  %v94_v30 = vld [vmem:[#allocation8 + $0x8] sm:$0xff] }
  0x60   :  { %v128_v55 = vmul.f32 %v112_v54, %v96_v53  ;;  %v161_v56 = vld [vmem:[#allocation8 + $0x98] sm:$0xff]  ;;  %v160_v12 = vld [vmem:[#allocation8 + $0x90] sm:$0xff]  ;;  %v127_v15 = vmul.f32 %v111_v11, %v95_v10  ;;  %v409_v31 = vadd.f32 %v393_v9, %v343_v19  ;;  %v110_v33 = vld [vmem:[#allocation9 + $0x8] sm:$0xff] }
  0x61   :  { %v178_v57 = vld [vmem:[#allocation9 + $0x98] sm:$0xff]  ;;  %587 = vmatprep.subr.mxu0 %v411_v48  ;;  %v177_v16 = vld [vmem:[#allocation9 + $0x90] sm:$0xff]  ;;  %v159_v34 = vld [vmem:[#allocation8 + $0x88] sm:$0xff]  ;;  %v126_v38 = vmul.f32 %v110_v33, %v94_v30 }
  0x62   :  { %v227_v58 = vld [vmem:[#allocation8 + $0x118] sm:$0xff]  ;;  %v194_v62 = vmul.f32 %v178_v57, %v161_v56  ;;  %588 = vmatpush3.msra.mxu0 %v411_v48  ;;  %v144_v2 = vadd.f32 %v128_v55, %v80_v52  ;;  %v226_v17 = vld [vmem:[#allocation8 + $0x110] sm:$0xff]  ;;  %v193_v20 = vmul.f32 %v177_v16, %v160_v12  ;;  %v143_v26 = vadd.f32 %v127_v15, %v79_v6  ;;  %v176_v35 = vld [vmem:[#allocation9 + $0x88] sm:$0xff] }
  0x63   :  { %v244_v63 = vld [vmem:[#allocation9 + $0x118] sm:$0xff]  ;;  %v243_v18 = vld [vmem:[#allocation9 + $0x110] sm:$0xff]  ;;  %589 = vmatprep.subr.mxu0 %v410_v7  ;;  %v192_v39 = vmul.f32 %v176_v35, %v159_v34  ;;  %v225_v40 = vld [vmem:[#allocation8 + $0x108] sm:$0xff]  ;;  %v142_v49 = vadd.f32 %v126_v38, %v78_v29 }
  0x64   :  { %v293_v0 = vld [vmem:[#allocation8 + $0x198] sm:$0xff]  ;;  %v260_v3 = vmul.f32 %v244_v63, %v227_v58  ;;  %v210_v13 = vadd.f32 %v194_v62, %v144_v2  ;;  %v292_v21 = vld [vmem:[#allocation8 + $0x190] sm:$0xff]  ;;  %590 = vmatpush3.msra.mxu0 %v410_v7  ;;  %v259_v27 = vmul.f32 %v243_v18, %v226_v17  ;;  %v209_v37 = vadd.f32 %v193_v20, %v143_v26  ;;  %v242_v41 = vld [vmem:[#allocation9 + $0x108] sm:$0xff] }
  0x65   :  { %v310_v1 = vld [vmem:[#allocation9 + $0x198] sm:$0xff]  ;;  %v309_v22 = vld [vmem:[#allocation9 + $0x190] sm:$0xff]  ;;  %v291_v42 = vld [vmem:[#allocation8 + $0x188] sm:$0xff]  ;;  %591 = vmatprep.subr.mxu0 %v409_v31  ;;  %v258_v50 = vmul.f32 %v242_v41, %v225_v40  ;;  %v208_v59 = vadd.f32 %v192_v39, %v142_v49 }
  0x66   :  { %v359_v4 = vld [vmem:[#allocation8 + $0x218] sm:$0xff]  ;;  %v326_v14 = vmul.f32 %v310_v1, %v293_v0  ;;  %v358_v23 = vld [vmem:[#allocation8 + $0x210] sm:$0xff]  ;;  %v276_v24 = vadd.f32 %v260_v3, %v210_v13  ;;  %v325_v32 = vmul.f32 %v309_v22, %v292_v21  ;;  %v308_v44 = vld [vmem:[#allocation9 + $0x188] sm:$0xff]  ;;  %592 = vmatpush3.msra.mxu0 %v409_v31  ;;  %v275_v48 = vadd.f32 %v259_v27, %v209_v37 }
  0x67   :  { %v376_v5 = vld [vmem:[#allocation9 + $0x218] sm:$0xff]  ;;  %v375_v28 = vld [vmem:[#allocation9 + $0x210] sm:$0xff]  ;;  %v357_v45 = vld [vmem:[#allocation8 + $0x208] sm:$0xff]  ;;  %v324_v60 = vmul.f32 %v308_v44, %v291_v42 }
  0x68   :  { %v392_v25 = vmul.f32 %v376_v5, %v359_v4  ;;  %v342_v36 = vadd.f32 %v326_v14, %v276_v24  ;;  %v391_v43 = vmul.f32 %v375_v28, %v358_v23  ;;  %v374_v46 = vld [vmem:[#allocation9 + $0x208] sm:$0xff]  ;;  %v77_v51 = vld [vmem:[#allocation6] sm:$0xff]  ;;  %v341_v58 = vadd.f32 %v325_v32, %v275_v48  ;;  %v437_v3 = vld [vmem:[#allocation3] sm:$0xff] }
  0x69   :  { %v93_v52 = vld [vmem:[#allocation8] sm:$0xff]  ;;  %v274_v5 = vadd.f32 %v258_v50, %v208_v59  ;;  %v390_v6 = vmul.f32 %v374_v46, %v357_v45  ;;  %601 = vmatprep.mubr.f32.mxu0 %v437_v3  ;;  %v438_v17 = vld [vmem:[#allocation3 + $0x8] sm:$0xff] }
  0x6a   :  { %v408_v47 = vadd.f32 %v392_v25, %v342_v36  ;;  %v109_v53 = vld [vmem:[#allocation9] sm:$0xff]  ;;  %v407_v4 = vadd.f32 %v391_v43, %v341_v58 }
  0x6b   :  { %v125_v54 = vmul.f32 %v109_v53, %v93_v52  ;;  %v158_v55 = vld [vmem:[#allocation8 + $0x80] sm:$0xff]  ;;  %v340_v11 = vadd.f32 %v324_v60, %v274_v5 }
  0x6c   :  { %v175_v56 = vld [vmem:[#allocation9 + $0x80] sm:$0xff]  ;;  %593 = vmatprep.subr.mxu0 %v408_v47 }
  0x6d   :  { %v224_v57 = vld [vmem:[#allocation8 + $0x100] sm:$0xff]  ;;  %v191_v61 = vmul.f32 %v175_v56, %v158_v55  ;;  %594 = vmatpush3.msra.mxu0 %v408_v47  ;;  %v141_v1 = vadd.f32 %v125_v54, %v77_v51  ;;  %v406_v14 = vadd.f32 %v390_v6, %v340_v11 }
  0x6e   :  { %v241_v62 = vld [vmem:[#allocation9 + $0x100] sm:$0xff]  ;;  %595 = vmatprep.subr.mxu0 %v407_v4 }
  0x6f   :  { %v290_v63 = vld [vmem:[#allocation8 + $0x180] sm:$0xff]  ;;  %v257_v2 = vmul.f32 %v241_v62, %v224_v57  ;;  %v207_v9 = vadd.f32 %v191_v61, %v141_v1  ;;  %596 = vmatpush3.msra.mxu0 %v407_v4 }
  0x70   :  { %v307_v0 = vld [vmem:[#allocation9 + $0x180] sm:$0xff]  ;;  %597 = vmatprep.subr.mxu0 %v406_v14 }
  0x71   :  { %v356_v7 = vld [vmem:[#allocation8 + $0x200] sm:$0xff]  ;;  %v323_v10 = vmul.f32 %v307_v0, %v290_v63  ;;  %v273_v12 = vadd.f32 %v257_v2, %v207_v9  ;;  %598 = vmatpush3.msra.mxu0 %v406_v14 }
  0x72   :  { %v373_v8 = vld [vmem:[#allocation9 + $0x200] sm:$0xff] }
  0x73   :  { %v389_v13 = vmul.f32 %v373_v8, %v356_v7  ;;  %v339_v15 = vadd.f32 %v323_v10, %v273_v12 }
  0x75   :  { %v405_v16 = vadd.f32 %v389_v13, %v339_v15 }
  0x77   :  { %599 = vmatprep.subr.mxu0 %v405_v16 }
  0x78   :  { %600 = vmatpush3.msra.mxu0 %v405_v16 }
  0x79   :  { %602 = vmatmul.mubr.f32.vlgmr.msra.gmra.mxu0 %v438_v17 }
 0x139   :  { %v603_v18 = vpop.f32.mrf.mxu0 }
 0x13a   :  { %531 = vst [vmem:[#allocation11 + $0x8] sm:$0xff] %v603_v18 }
 0x13b   :  { %v521_v19 = vpop.f32.mrf.mxu0 }
 0x13c   :  { %530 = vst [vmem:[#allocation11] sm:$0xff] %v521_v19 }
 0x13d   :  { %702 = shalt.err (!%p699_p10)
}
 0x13e   :  { %543 = dma.vmem_to_hbm [thread:$0]  %s538_s3, 256, %s785_s4, [#allocation5], %s721_s20, %s721_s20, %s722_s21  }
 0x13f   :  { %717 = dma.done.wait [#allocation5], 256  }
 0x140   :  { %718 = vsyncadd [#allocation5], 4294967040 }
 0x141   :  { %547 = vsyncpa [#allocation4], 1 }
 0x142   :  { %548 = vsyncpa [#allocation7], 1 }
 0x143   :  { %549 = vsyncpa [#allocation10], 1 }
 0x144   :  { %550 = vsyncpa [#allocation5], 1 }

</bundles_post_ra>
